<compile_context>
chip_gen: v7x
topology: tpu7x:2x2x1
jax: 0.10.0
libtpu: 0.0.40
codegen_flags: <defaults>
</compile_context>

<pallas_src>
import functools
import math

import jax
import jax.numpy as jnp
from jax import lax
from jax.experimental import pallas as pl
from jax.experimental.pallas import tpu as pltpu

TIME_EMB_DIM = 128     # lane-dense (multiple of 128)
LABEL_EMB_DIM = 128
HIDDEN_DIM = 512


def _mosaic(dims):
    return pltpu.CompilerParams(
        dimension_semantics=dims,
        vmem_limit_bytes=32 * 1024 * 1024,   # explicit; well within v7x's 64 MiB
    )


def _tile(dim, pref):
    for t in (pref, 256, 128):
        if t <= dim and dim % t == 0:
            return t
    return dim


# ----------------------------------------------------------------------------
# Kernel 1: q(x_t | x_0)  -- noisy = sqrt(abar_t)*x + sqrt(1-abar_t)*noise
# per-sample scalar coefficients, lane-dense tiles over the feature axis.
# ----------------------------------------------------------------------------
def _add_noise_kernel(coef_ref, x_ref, n_ref, o_ref):
    ca = coef_ref[:, 0:1]
    cb = coef_ref[:, 1:2]
    o_ref[...] = ca * x_ref[...] + cb * n_ref[...]


def add_noise(coef, x_flat, noise_flat, *, td_pref=512):
    B, D = x_flat.shape
    td = td_pref if D % td_pref == 0 else D
    grid = (D // td,)
    return pl.pallas_call(
        _add_noise_kernel,
        out_shape=jax.ShapeDtypeStruct((B, D), jnp.float32),
        grid_spec=pltpu.PrefetchScalarGridSpec(
            num_scalar_prefetch=0,
            grid=grid,
            in_specs=[pl.BlockSpec((B, 2), lambda j: (0, 0)),
                      pl.BlockSpec((B, td), lambda j: (0, j)),
                      pl.BlockSpec((B, td), lambda j: (0, j))],
            out_specs=pl.BlockSpec((B, td), lambda j: (0, j))),
        compiler_params=_mosaic(("parallel",)),
    )(coef.astype(jnp.float32), x_flat.astype(jnp.float32),
      noise_flat.astype(jnp.float32))


# ----------------------------------------------------------------------------
# Kernel 2: fused linear layer  y = act(x @ W + b)
# bf16 operands on the MXU, f32 accumulator scratch, bias+activation epilogue,
# bf16 output (halves inter-layer HBM traffic).
# ----------------------------------------------------------------------------
def _linear_kernel(x_ref, w_ref, b_ref, o_ref, acc_ref, *, act, n_k):
    k = pl.program_id(2)

    @pl.when(k == 0)
    def _():
        acc_ref[...] = jnp.zeros_like(acc_ref)

    acc_ref[...] += jnp.dot(x_ref[...], w_ref[...],
                            preferred_element_type=jnp.float32)

    @pl.when(k == n_k - 1)
    def _():
        y = acc_ref[...] + b_ref[...]
        if act == "relu":
            y = jnp.maximum(y, 0.0)
        elif act == "sigmoid":
            y = jax.nn.sigmoid(y)
        o_ref[...] = y.astype(o_ref.dtype)


def fused_linear(x, w, b, *, act="none", out_dtype=jnp.bfloat16,
                 tn_pref=256, tk_pref=256):
    M, K = x.shape
    Kw, N = w.shape
    assert K == Kw
    tm = M                                  # M already padded to a multiple of 8
    tn = _tile(N, tn_pref)
    tk = _tile(K, tk_pref)
    grid = (M // tm, N // tn, K // tk)
    kern = functools.partial(_linear_kernel, act=act, n_k=grid[2])
    return pl.pallas_call(
        kern,
        out_shape=jax.ShapeDtypeStruct((M, N), out_dtype),
        grid_spec=pltpu.PrefetchScalarGridSpec(
            num_scalar_prefetch=0,
            grid=grid,
            in_specs=[pl.BlockSpec((tm, tk), lambda i, j, k: (i, k)),
                      pl.BlockSpec((tk, tn), lambda i, j, k: (k, j)),
                      pl.BlockSpec((1, tn), lambda i, j, k: (0, j))],
            out_specs=pl.BlockSpec((tm, tn), lambda i, j, k: (i, j)),
            scratch_shapes=[pltpu.VMEM((tm, tn), jnp.float32)]),
        compiler_params=_mosaic(("parallel", "parallel", "arbitrary")),
    )(x.astype(jnp.bfloat16), w.astype(jnp.bfloat16),
      b.reshape(1, N).astype(jnp.float32))


# ----------------------------------------------------------------------------
# Kernel 3: final linear layer with the MSE loss fused into the epilogue.
# Output is a single (1,1) scalar accumulated across all (m, n, k) tiles;
# padded batch rows are masked out.
# ----------------------------------------------------------------------------
def _linear_mse_kernel(x_ref, w_ref, b_ref, t_ref, loss_ref, acc_ref, *,
                       n_k, tm, valid_rows, inv_denom):
    m = pl.program_id(0)
    n = pl.program_id(1)
    k = pl.program_id(2)

    @pl.when((m == 0) & (n == 0) & (k == 0))
    def _():
        loss_ref[...] = jnp.zeros_like(loss_ref)

    @pl.when(k == 0)
    def _():
        acc_ref[...] = jnp.zeros_like(acc_ref)

    acc_ref[...] += jnp.dot(x_ref[...], w_ref[...],
                            preferred_element_type=jnp.float32)

    @pl.when(k == n_k - 1)
    def _():
        y = acc_ref[...] + b_ref[...]              # estimated noise tile (f32)
        d = y - t_ref[...]                         # diff vs true noise
        row = lax.broadcasted_iota(jnp.int32, d.shape, 0) + m * tm
        d = jnp.where(row < valid_rows, d, 0.0)    # mask sublane-padding rows
        part = jnp.sum(d * d, axis=1, keepdims=True)   # lane reduce  -> (tm, 1)
        part = jnp.sum(part, axis=0, keepdims=True)    # sublane reduce -> (1, 1)
        loss_ref[...] = loss_ref[...] + part * inv_denom


def fused_linear_mse(x, w, b, target, *, valid_rows, tn_pref=256, tk_pref=256):
    M, K = x.shape
    Kw, N = w.shape
    assert K == Kw and target.shape == (M, N)
    tm = M
    tn = _tile(N, tn_pref)
    tk = _tile(K, tk_pref)
    grid = (M // tm, N // tn, K // tk)
    inv_denom = 1.0 / float(valid_rows * N)
    kern = functools.partial(_linear_mse_kernel, n_k=grid[2], tm=tm,
                             valid_rows=valid_rows, inv_denom=inv_denom)
    loss = pl.pallas_call(
        kern,
        out_shape=jax.ShapeDtypeStruct((1, 1), jnp.float32),
        grid_spec=pltpu.PrefetchScalarGridSpec(
            num_scalar_prefetch=0,
            grid=grid,
            in_specs=[pl.BlockSpec((tm, tk), lambda i, j, k: (i, k)),
                      pl.BlockSpec((tk, tn), lambda i, j, k: (k, j)),
                      pl.BlockSpec((1, tn), lambda i, j, k: (0, j)),
                      pl.BlockSpec((tm, tn), lambda i, j, k: (i, j))],
            out_specs=pl.BlockSpec((1, 1), lambda i, j, k: (0, 0)),
            scratch_shapes=[pltpu.VMEM((tm, tn), jnp.float32)]),
        # output is shared across every grid axis -> all axes must be arbitrary
        compiler_params=_mosaic(("arbitrary", "arbitrary", "arbitrary")),
    )(x.astype(jnp.bfloat16), w.astype(jnp.bfloat16),
      b.reshape(1, N).astype(jnp.float32), target.astype(jnp.float32))
    return loss[0, 0]


# ----------------------------------------------------------------------------
# Kernel 4: recover_sample  -- out = a*x_t + b*eps_hat + c*z   (per-sample a,b,c)
# ----------------------------------------------------------------------------
def _affine3_kernel(coef_ref, x_ref, y_ref, z_ref, o_ref):
    a = coef_ref[:, 0:1]
    b = coef_ref[:, 1:2]
    c = coef_ref[:, 2:3]
    o_ref[...] = a * x_ref[...] + b * y_ref[...] + c * z_ref[...]


def affine3(coef, x_flat, y_flat, z_flat, *, td_pref=512):
    B, D = x_flat.shape
    td = td_pref if D % td_pref == 0 else D
    grid = (D // td,)
    return pl.pallas_call(
        _affine3_kernel,
        out_shape=jax.ShapeDtypeStruct((B, D), jnp.float32),
        grid_spec=pltpu.PrefetchScalarGridSpec(
            num_scalar_prefetch=0,
            grid=grid,
            in_specs=[pl.BlockSpec((B, 3), lambda j: (0, 0)),
                      pl.BlockSpec((B, td), lambda j: (0, j)),
                      pl.BlockSpec((B, td), lambda j: (0, j)),
                      pl.BlockSpec((B, td), lambda j: (0, j))],
            out_specs=pl.BlockSpec((B, td), lambda j: (0, j))),
        compiler_params=_mosaic(("parallel",)),
    )(coef.astype(jnp.float32), x_flat.astype(jnp.float32),
      y_flat.astype(jnp.float32), z_flat.astype(jnp.float32))


# ----------------------------------------------------------------------------
# Variance scheduler (precomputed tables, init-time plain JAX)
# ----------------------------------------------------------------------------
def make_variance_scheduler(beta_start=1e-4, beta_end=0.02, num_steps=1000,
                            interpolation="cosine"):
    if interpolation == "cosine":
        s = 0.008
        steps = num_steps + 1
        x = jnp.linspace(0.0, float(num_steps), steps)
        ac = jnp.cos((x / num_steps + s) / (1 + s) * jnp.pi * 0.5) ** 2
        ac = ac / ac[0]
        betas = 1.0 - ac[1:] / ac[:-1]
        betas = jnp.clip(betas, 0.0001, 0.9999)
    else:
        betas = jnp.linspace(beta_start ** 0.5, beta_end ** 0.5, num_steps) ** 2
    alphas = 1.0 - betas
    alpha_bar = jnp.cumprod(alphas)
    posterior_variance = betas * (1.0 - jnp.roll(alpha_bar, 1)) / (1.0 - alpha_bar)
    posterior_variance = posterior_variance.at[0].set(betas[0])
    return {
        "num_steps": num_steps,
        "betas": betas,
        "alphas": alphas,
        "alpha_bar": alpha_bar,
        "sqrt_alpha_bar": jnp.sqrt(alpha_bar),
        "sqrt_one_minus_alpha_bar": jnp.sqrt(1.0 - alpha_bar),
        "sqrt_recip_alphas": jnp.sqrt(1.0 / alphas),
        "posterior_variance": posterior_variance,
    }


# ----------------------------------------------------------------------------
# Stand-in noise-prediction network (time + label conditioned MLP)
# ----------------------------------------------------------------------------
def sinusoidal_time_embedding(t, dim):
    half = dim // 2
    freqs = jnp.exp(-math.log(10000.0) *
                    jnp.arange(half, dtype=jnp.float32) / half)
    ang = t.astype(jnp.float32)[:, None] * freqs[None, :]
    return jnp.concatenate([jnp.sin(ang), jnp.cos(ang)], axis=1)


def init_network_params(key, img_dim, num_classes):
    d_in = img_dim + TIME_EMB_DIM + LABEL_EMB_DIM
    keys = jax.random.split(key, 4)

    def nrm(k, shape, scale):
        return scale * jax.random.normal(k, shape, jnp.float32)

    return {
        "label_emb": nrm(keys[0], (num_classes, LABEL_EMB_DIM), 1.0),
        "w1": nrm(keys[1], (d_in, HIDDEN_DIM), 1.0 / math.sqrt(d_in)),
        "b1": jnp.zeros((HIDDEN_DIM,), jnp.float32),
        "w2": nrm(keys[2], (HIDDEN_DIM, HIDDEN_DIM), 1.0 / math.sqrt(HIDDEN_DIM)),
        "b2": jnp.zeros((HIDDEN_DIM,), jnp.float32),
        "w3": nrm(keys[3], (HIDDEN_DIM, img_dim), 1.0 / math.sqrt(HIDDEN_DIM)),
        "b3": jnp.zeros((img_dim,), jnp.float32),
    }


# ----------------------------------------------------------------------------
# DDPM.forward
# ----------------------------------------------------------------------------
def ddpm_forward(params, sched, x, label, key):
    B, C, H, W = x.shape
    D = C * H * W
    kt, kn = jax.random.split(key)

    # t ~ U{0, num_steps-1};  noise ~ N(0, I)
    t = jax.random.randint(kt, (B,), 0, sched["num_steps"])
    noise = jax.random.normal(kn, x.shape, jnp.float32)

    # add_noise: noisy = sqrt(abar_t) * x + sqrt(1 - abar_t) * noise
    coef = jnp.stack([sched["sqrt_alpha_bar"][t],
                      sched["sqrt_one_minus_alpha_bar"][t]], axis=1)     # (B, 2)
    x_flat = x.reshape(B, D)
    n_flat = noise.reshape(B, D)
    noisy_flat = add_noise(coef, x_flat, n_flat)                          # Pallas

    # ---- noise-prediction network ----
    # TODO(synk): DDPM receives the denoising network as an injected nn.Module
    # whose architecture is not given in the spec; a small conditional-MLP noise
    # predictor built from the Pallas fused-matmul kernels stands in for it.
    t_emb = sinusoidal_time_embedding(t, TIME_EMB_DIM)                   # (B, 128)
    l_emb = params["label_emb"][label]                                   # (B, 128)
    net_in = jnp.concatenate([noisy_flat, t_emb, l_emb], axis=1)         # (B, D+256)

    mp = max(8, ((B + 7) // 8) * 8)            # pad batch rows to sublane multiple
    pad = mp - B
    net_in_p = jnp.pad(net_in, ((0, pad), (0, 0)))
    target_p = jnp.pad(n_flat, ((0, pad), (0, 0)))

    h1 = fused_linear(net_in_p, params["w1"], params["b1"], act="relu")   # bf16
    h2 = fused_linear(h1, params["w2"], params["b2"], act="relu")         # bf16
    # final layer + F.mse_loss(est_noise, noise) fused in one kernel
    loss = fused_linear_mse(h2, params["w3"], params["b3"], target_p,
                            valid_rows=B)
    return loss


# ----------------------------------------------------------------------------
# DDPM.recover_sample (one reverse-diffusion step)
# ----------------------------------------------------------------------------
def recover_sample(sched, noisy, est_noise, timestep, key):
    B, C, H, W = noisy.shape
    D = C * H * W
    beta_t = sched["betas"][timestep]
    alpha_t = sched["alphas"][timestep]
    alpha_bar_t = sched["alpha_bar"][timestep]

    c1 = 1.0 / jnp.sqrt(alpha_t)
    c2 = beta_t / jnp.sqrt(1.0 - alpha_bar_t)
    add_flag = (jnp.min(timestep) > 0).astype(jnp.float32)
    c3 = jnp.sqrt(beta_t) * add_flag
    coef = jnp.stack([c1, -c1 * c2, c3], axis=1)                         # (B, 3)

    z = jax.random.normal(key, noisy.shape, jnp.float32)
    out = affine3(coef, noisy.reshape(B, D), est_noise.reshape(B, D),
                  z.reshape(B, D))
    return out.reshape(noisy.shape)


# ----------------------------------------------------------------------------
if __name__ == "__main__":
    # DDPM.generate_sample implies 1x32x32 images
    B, C, H, W = 2, 1, 32, 32
    num_classes = 10

    key = jax.random.PRNGKey(0)
    kp, kx, kl, kf, kr = jax.random.split(key, 5)

    sched = make_variance_scheduler(num_steps=1000, interpolation="cosine")
    params = init_network_params(kp, C * H * W, num_classes)

    x = jax.random.normal(kx, (B, C, H, W), jnp.float32)
    label = jax.random.randint(kl, (B,), 0, num_classes)

    # forward: returns the scalar MSE training loss (as in DDPM.forward)
    loss = ddpm_forward(params, sched, x, label, kf)
    jax.block_until_ready(loss)
    assert loss.shape == ()
    assert bool(jnp.isfinite(loss))

    # exercise recover_sample (one reverse step) as well
    t_step = jnp.full((B,), 10, jnp.int32)
    est = jax.random.normal(kr, (B, C, H, W), jnp.float32)
    rec = recover_sample(sched, x, est, t_step, kr)
    jax.block_until_ready(rec)
    assert rec.shape == x.shape
    assert bool(jnp.all(jnp.isfinite(rec)))

    print("KERNEL_OK")
</pallas_src>

<mosaic_0001>
module attributes {stable_mosaic.version = 11 : i64} {
  func.func @_add_noise_kernel(%arg0: i32, %arg1: memref<2x2xf32, #tpu.memory_space<vmem>>, %arg2: memref<2x512xf32, #tpu.memory_space<vmem>>, %arg3: memref<2x512xf32, #tpu.memory_space<vmem>>, %arg4: memref<2x512xf32, #tpu.memory_space<vmem>>) attributes {dimension_semantics = [#tpu.dimension_semantics<parallel>], iteration_bounds = array<i64: 2>, scalar_prefetch = 0 : i64, scratch_operands = 0 : i64, tpu.core_type = #tpu.core_type<tc>, window_params = [{pipeline_mode = #tpu.pipeline_mode<synchronous>, transform_indices = @transform_0, window_bounds = array<i64: 2, 2>}, {transform_indices = @transform_1, window_bounds = array<i64: 2, 512>}, {transform_indices = @transform_2, window_bounds = array<i64: 2, 512>}, {transform_indices = @transform_3, window_bounds = array<i64: 2, 512>}]} {
    %c0 = arith.constant 0 : index
    %c0_0 = arith.constant 0 : index
    %0 = vector.load %arg1[%c0, %c0_0] : memref<2x2xf32, #tpu.memory_space<vmem>>, vector<2x1xf32>
    %c0_1 = arith.constant 0 : index
    %c1 = arith.constant 1 : index
    %1 = vector.load %arg1[%c0_1, %c1] : memref<2x2xf32, #tpu.memory_space<vmem>>, vector<2x1xf32>
    %c0_2 = arith.constant 0 : index
    %c0_3 = arith.constant 0 : index
    %2 = vector.load %arg2[%c0_2, %c0_3] : memref<2x512xf32, #tpu.memory_space<vmem>>, vector<2x512xf32>
    %3 = vector.broadcast %0 : vector<2x1xf32> to vector<2x512xf32>
    %4 = arith.mulf %3, %2 : vector<2x512xf32>
    %c0_4 = arith.constant 0 : index
    %c0_5 = arith.constant 0 : index
    %5 = vector.load %arg3[%c0_4, %c0_5] : memref<2x512xf32, #tpu.memory_space<vmem>>, vector<2x512xf32>
    %6 = vector.broadcast %1 : vector<2x1xf32> to vector<2x512xf32>
    %7 = arith.mulf %6, %5 : vector<2x512xf32>
    %8 = arith.addf %4, %7 : vector<2x512xf32>
    %c0_6 = arith.constant 0 : index
    %c0_7 = arith.constant 0 : index
    %9 = vector.load %arg4[%c0_6, %c0_7] : memref<2x512xf32, #tpu.memory_space<vmem>>, vector<2x512xf32>
    tpu.vector_store %arg4[%c0_6, %c0_7], %8 {strides = array<i32>} : memref<2x512xf32, #tpu.memory_space<vmem>>, vector<2x512xf32>,
    return
  }
  func.func @transform_0(%arg0: i32) -> (i32, i32) {
    %c0_i32 = arith.constant 0 : i32
    %c0_i32_0 = arith.constant 0 : i32
    %c0_i32_1 = arith.constant 0 : i32
    return %c0_i32, %c0_i32_0 : i32, i32
  }
  func.func @transform_1(%arg0: i32) -> (i32, i32) {
    %c0_i32 = arith.constant 0 : i32
    %c0_i32_0 = arith.constant 0 : i32
    return %c0_i32, %arg0 : i32, i32
  }
  func.func @transform_2(%arg0: i32) -> (i32, i32) {
    %c0_i32 = arith.constant 0 : i32
    %c0_i32_0 = arith.constant 0 : i32
    return %c0_i32, %arg0 : i32, i32
  }
  func.func @transform_3(%arg0: i32) -> (i32, i32) {
    %c0_i32 = arith.constant 0 : i32
    %c0_i32_0 = arith.constant 0 : i32
    return %c0_i32, %arg0 : i32, i32
  }
}

</mosaic_0001>

<bundles_post_ra>
// kernel: tpu_custom_call.1
= control target key start
LH: loop header
LB: loop body
LE: loop exit
PB: predicated region body
PF: predicated region fallthrough
CT: control target
= control target key end

     0   :  { %8 = vsyncpa [#allocation3], 0  ;;  %s966_s0 = inlined_call_operand.hbm [shape: f32[2,2], index: 0, kind: input, shape index: {}]   ;;  %s967_s1 = inlined_call_operand.hbm [shape: f32[2,1024], index: 1, kind: input, shape index: {}]   ;;  %s968_s2 = inlined_call_operand.hbm [shape: f32[2,1024], index: 2, kind: input, shape index: {}]   ;;  %s969_s3 = inlined_call_operand.hbm [shape: f32[2,1024], index: 3, kind: output, shape index: {}]  }
   0x1   :  { %9 = vsyncpa [#allocation6], 0 }
   0x2   :  { %11 = vsyncpa [#allocation6 + $0x1], 0 }
   0x3   :  { %12 = vsyncpa [#allocation4], 0 }
   0x4   :  { %14 = vsyncpa [#allocation4 + $0x1], 0  ;;  %s725_s12 = smov 0   ;;  %s727_s13 = smov 0  }
   0x5   :  { %s729_s14 = smov 0   ;;  %s731_s15 = smov 0  }
   0x6 LB: > { %s746_s16 = sadd.s32 1, %s696_s15   ;;  %s48_s17 = sadd.s32 1, %s692_s14  ;;  %s696_s15 = sphi %s731_s15, %s994_s15   ;;  %s692_s14 = sphi %s729_s14, %s993_s14   ;;  %s688_s13 = sphi %s727_s13, %s992_s13   ;;  %s684_s12 = sphi %s725_s12, %s991_s12  }
   0x7   : > { %s45_s18 = ssub.s32 %s696_s15, %s746_s16  ;;  %p55_p0 = scmp.ne.s32.totalorder %s692_s14, %s688_s13 }
   0x8   : > { %p46_p1 = scmp.eq.s32.totalorder %s45_s18, 0  ;;  %p56_p2 = scmp.eq.s32.totalorder %s696_s15, 0 }
   0x9   : > { %p495_p4 = scmp.lt.s32.totalorder %s696_s15, 2  ;;  %s148_s20 = sand.u32 1, %s696_s15  }
   0xa   : > { %s757_s19 = scalar_select %p46_p1, %s692_s14, %s48_s17  }
   0xb   : > { %p57_p5 = por %p56_p2, %p55_p0  ;;  %s150_s21 = sand.u32 1, %s692_s14  }
   0xc   : > { %s764_s22 = sshll.u32 %s150_s21, 3  ;;  %s466_s23 = sshll.u32 %s696_s15, 7 }
   0xd   : > { %s772_s26 = scalar_lea.hbm %s967_s1, %s466_s23  ;;  %s152_s27 = scalar_lea.vmem [#allocation5], %s764_s22 }
   0xe   : > { %s160_s28 = sshll.u32 %s152_s27, 4  ;;  %p775_p6 = pnand %p495_p4, %p57_p5  ;;  %s779_s28 = int_to_ptr.vmem [resolvable:$true] %s160_s28 }
   0xf   : > { %s781_s30 = scalar_lea.sflag [#allocation6], %s148_s20  ;;  %s538_s4 = scalar_lea.hbm %s772_s26, 128 }
  0x10   : > { %p539_p7 = scmp.ne.s32.totalorder %s772_s26, %s538_s4  ;;  %p540_p8 = pneg %p775_p6 }
  0x11   : > { %s543_s7 = scalar_lea.hbm %s967_s1, 256  ;;  %p544_p11 = scmp.lt.u32.totalorder %s772_s26, %s967_s1 }
  0x12   : > { %p541_p9 = pnand %p540_p8, %p539_p7  ;;  %p545_p12 = scmp.lt.u32.totalorder %s543_s7, %s538_s4 }
  0x13   : > { %p547_p1 = scmp.lt.u32.totalorder %s538_s4, %s772_s26 }
  0x14   : > { %p542_p10 = pneg %p541_p9  ;;  %p546_p13 = por %p545_p12, %p544_p11 }
  0x16   : > { %p548_p2 = por %p547_p1, %p546_p13 }
  0x18   : > { %p549_p4 = pnand %p548_p2, %p542_p10 }
  0x1a   : > { %552 = shalt.err (!%p549_p4)
}
  0x1b   : > { %s553_s10 = scalar_lea.vmem %s779_s28, 128  ;;  %s698_s11 = smov [#allocation5]  }
  0x1c   : > { %p554_p5 = scmp.ne.s32.totalorder %s779_s28, %s553_s10  ;;  %s558_s17 = sshll.u32 %s698_s11, 4  ;;  %s559_s17 = int_to_ptr.vmem [resolvable:$false] %s558_s17 }
  0x1d   : > { %s560_s18 = scalar_lea.vmem %s559_s17, 256  ;;  %p561_p3 = scmp.lt.s32.totalorder %s779_s28, %s559_s17 }
  0x1e   : > { %p556_p7 = pnand %p554_p5, %p540_p8  ;;  %p562_p11 = scmp.lt.s32.totalorder %s560_s18, %s553_s10 }
  0x20   : > { %p557_p9 = pneg %p556_p7  ;;  %p563_p12 = por %p562_p11, %p561_p3 }
  0x22   : > { %p564_p13 = pnand %p563_p12, %p557_p9 }
  0x24   : > { %567 = shalt.err (!%p564_p13)
}
  0x25   : > { %486 = dma.hbm_to_vmem [thread:$0]  (!%p775_p6), %s772_s26, 128, %s779_s28, %s781_s30  }
  0x26   : > { %s810_s20 = sadd.s32 4294967295, %s696_s15   ;;  %s446_s21 = sadd.s32 4294967294, %s696_s15  }
  0x27   : > { %p61_p3 = scmp.ne.s32.totalorder %s688_s13, %s684_s12  ;;  %p970_p10 = scmp.eq.s32.totalorder %s810_s20, 0 }
  0x28   : > { %p111_p1 = scmp.eq.s32.totalorder %s810_s20, 1  ;;  %p117_p2 = scmp.eq.s32.totalorder %s446_s21, 1 }
  0x29   : > { %p819_p4 = por %p970_p10, %p61_p3  ;;  %p447_p5 = scmp.ge.s32.totalorder %s696_s15, 1 }
  0x2a   : > { %p827_p7 = por %p111_p1, %p55_p0  ;;  %p831_p9 = por %p117_p2, %p61_p3 }
  0x2b   : > { %s976_s24 = scalar_select %p819_p4, 1, 0 }
  0x2c   : > { %s977_s25 = scalar_select %p827_p7, 1, 0 }
  0x2d   : > { %s978_s26 = scalar_select %p831_p9, 1, 0 }
  0x2e   : > { %p124_p11 = scmp.lt.s32.totalorder %s696_s15, 3  ;;  %s171_s27 = scalar_lea.vmem [#allocation7], %s764_s22 }
  0x2f   : > { %s179_s28 = sshll.u32 %s171_s27, 4  ;;  %s842_s6 = scalar_lea.hbm %s968_s2, %s466_s23  ;;  %s180_s28 = int_to_ptr.vmem [resolvable:$true] %s179_s28 }
  0x30   : > { %p844_p0 = pnand %p447_p5, %p124_p11  ;;  %s699_s8 = smov [#allocation2]  }
  0x31   : > { %s848_s9 = sshll.u32 %s699_s8, 4  ;;  %s568_s22 = scalar_lea.hbm %s842_s6, 128  ;;  %s138_s9 = int_to_ptr.vmem [resolvable:$true] %s848_s9 }
  0x32   : > { %s979_s7 = scalar_select %p844_p0, 1, 0 }
  0x33   : > { %p569_p13 = scmp.ne.s32.totalorder %s842_s6, %s568_s22  ;;  %s573_s11 = scalar_lea.hbm %s968_s2, 256 }
  0x34   : > { %p574_p2 = scmp.lt.u32.totalorder %s842_s6, %s968_s2  ;;  %p575_p5 = scmp.lt.u32.totalorder %s573_s11, %s568_s22 }
  0x35   : > { %p571_p3 = pnand %p569_p13, %p540_p8  ;;  %p577_p10 = scmp.lt.u32.totalorder %s568_s22, %s842_s6 }
  0x36   : > { %p576_p11 = por %p575_p5, %p574_p2 }
  0x37   : > { %p572_p1 = pneg %p571_p3 }
  0x38   : > { %p578_p9 = por %p577_p10, %p576_p11 }
  0x3a   : > { %p579_p7 = pnand %p578_p9, %p572_p1 }
  0x3c   : > { %582 = shalt.err (!%p579_p7)
}
  0x3d   : > { %s583_s21 = scalar_lea.vmem %s180_s28, 128  ;;  %s700_s27 = smov [#allocation7]  }
  0x3e   : > { %p584_p12 = scmp.ne.s32.totalorder %s180_s28, %s583_s21  ;;  %s588_s4 = sshll.u32 %s700_s27, 4  ;;  %s589_s4 = int_to_ptr.vmem [resolvable:$false] %s588_s4 }
  0x3f   : > { %s590_s5 = scalar_lea.vmem %s589_s4, 256  ;;  %p591_p4 = scmp.lt.s32.totalorder %s180_s28, %s589_s4 }
  0x40   : > { %p586_p13 = pnand %p584_p12, %p540_p8  ;;  %p592_p0 = scmp.lt.s32.totalorder %s590_s5, %s583_s21 }
  0x42   : > { %p587_p3 = pneg %p586_p13  ;;  %p593_p2 = por %p592_p0, %p591_p4 }
  0x44   : > { %p594_p5 = pnand %p593_p2, %p587_p3 }
  0x46   : > { %597 = shalt.err (!%p594_p5)
}
  0x47   : > { %489 = dma.hbm_to_vmem [thread:$0]  (!%p775_p6), %s842_s6, 128, %s180_s28, %s781_s30  }
  0x48   : > { %p980_p8 = scmp.eq.s32.totalorder %s810_s20, 0  ;;  %p981_p10 = scmp.ne.s32.totalorder %s979_s7, 0 }
  0x49   : > { %s598_s10 = scalar_lea.hbm %s966_s0, 32 }
  0x4a   : > { %p982_p7 = pneg %p981_p10  ;;  %p599_p4 = scmp.ne.s32.totalorder %s966_s0, %s598_s10 }
  0x4b   : > { %p605_p1 = scmp.lt.u32.totalorder %s598_s10, %s966_s0 }
  0x4c   : > { %p878_p9 = pnand %p982_p7, %p980_p8 }
  0x4e   : > { %p600_p0 = pneg %p878_p9 }
  0x50   : > { %p601_p6 = pnand %p600_p0, %p599_p4 }
  0x52   : > { %p602_p12 = pneg %p601_p6 }
  0x54   : > { %p607_p11 = pnand %p605_p1, %p602_p12 }
  0x56   : > { %610 = shalt.err (!%p607_p11)
}
  0x57   : > { %s611_s6 = scalar_lea.vmem %s138_s9, 32  ;;  %p619_p5 = scmp.lt.s32.totalorder %s138_s9, %s138_s9 }
  0x58   : > { %p612_p13 = scmp.ne.s32.totalorder %s138_s9, %s611_s6  ;;  %p620_p8 = scmp.lt.s32.totalorder %s611_s6, %s611_s6 }
  0x5a   : > { %p614_p3 = pnand %p612_p13, %p600_p0  ;;  %p621_p7 = por %p620_p8, %p619_p5 }
  0x5c   : > { %p615_p2 = pneg %p614_p3 }
  0x5e   : > { %p622_p10 = pnand %p621_p7, %p615_p2 }
  0x60   : > { %625 = shalt.err (!%p622_p10)
}
  0x61   : > { %482 = dma.hbm_to_vmem [thread:$0]  (!%p878_p9), %s966_s0, 32, %s138_s9, [#allocation3]  }
  0x62   : > { %p984_p4 = scmp.ne.s32.totalorder %s979_s7, 0 }
  0x63   : > { %p985_p6 = scmp.eq.s32.totalorder (!%p984_p4), %s810_s20, 0 }
  0x64   : > { %188 = sbr.rel (%p984_p4) target bundleno = 272 (0x110), region = 32 }
  0x6b   : > { %671 = dma.done.wait (%p985_p6), [#allocation3], 32   ;;  %p986_p0 = pmov %p985_p6 }
  0x6c   : > { %s194_s21 = sand.u32 1, %s810_s20   ;;  %s196_s27 = sand.u32 1, %s688_s13  }
  0x6d   : > { %673 = vsyncadd (%p986_p0), [#allocation3], 4294967264  ;;  %s908_s4 = sshll.u32 %s196_s27, 3  ;;  %s195_s9 = scalar_lea.sflag [#allocation6], %s194_s21 }
  0x6e   : > { %s198_s5 = scalar_lea.vmem [#allocation5], %s908_s4  ;;  %p987_p10 = scmp.ne.s32.totalorder %s976_s24, 0 }
  0x70   : > { %675 = dma.done.wait (%p987_p10), %s195_s9, 256  }
  0x71   : > { %677 = vsyncadd (%p987_p10), %s195_s9, 4294967040  ;;  %v701_v0 = vmov 0   ;;  %v238_v1 = vld [vmem:[#allocation2] sm:$0x3]  ;;  %v702_v2 = vmov 1   ;;  %v250_v5 = vlaneseq  ;;  %v239_v8 = vld [vmem:[%s198_s5] sm:$0xff] }
  0x72   : > { %534 = vset.pattern.permute.xlu0 %v701_v0  ;;  %v703_v3 = vmov 1983009808   ;;  %s207_s7 = scalar_lea.vmem [#allocation7], %s908_s4  ;;  %v246_v10 = vcombine.high %v239_v8, %v239_v8  ;;  %s468_s24 = sshll.u32 %s810_s20, 7 }
  0x73   : > { %242 = vperm.xlu0 %534, %v238_v1   ;;  %v248_v4 = vunpack.c.l.s4 %v703_v3  ;;  %v251_v7 = vshrl.u32 %v250_v5, 7  ;;  %v271_v9 = vld [vmem:[%s207_s7] sm:$0xff]  ;;  %s234_s8 = scalar_lea.vmem [#allocation8], %s908_s4  ;;  %s921_s29 = scalar_lea.hbm %s969_s3, %s468_s24 }
  0x74   : > { %v277_v12 = vcombine.high %v271_v9, %v271_v9  ;;  %s344_s22 = sshll.u32 %s234_s8, 4  ;;  %s330_s11 = scalar_lea.sflag [#allocation4], %s196_s27  ;;  %s923_s22 = int_to_ptr.vmem [resolvable:$true] %s344_s22 }
  0x75   : > { %v249_v6 = vunpack.c.0.s8 %v248_v4  ;;  %s626_s30 = scalar_lea.vmem %s923_s22, 128  ;;  %p988_p12 = scmp.ne.s32.totalorder %s977_s25, 0 }
  0x76   : > { %p627_p9 = scmp.ne.s32.totalorder %s923_s22, %s626_s30  ;;  %s704_s20 = smov [#allocation8]  }
  0x77   : > { %535 = vset.pattern.permute.xlu0 %v702_v2  ;;  %v252_v11 = vsub.s32 %v249_v6, %v251_v7  ;;  %s630_s28 = sshll.u32 %s704_s20, 4  ;;  %s631_s28 = int_to_ptr.vmem [resolvable:$false] %s630_s28 }
  0x78   : > { %273 = vperm.xlu0 %535, %v238_v1   ;;  %p628_p1 = pnand %p627_p9, %p988_p12  ;;  %s632_s6 = scalar_lea.vmem %s631_s28, 256 }
  0x79   : > { %v253_v13 = vrot.slane %v239_v8, %v252_v11  ;;  %v260_v14 = vrot.slane %v246_v10, %v252_v11  ;;  %v284_v15 = vrot.slane %v271_v9, %v252_v11  ;;  %v291_v16 = vrot.slane %v277_v12, %v252_v11  ;;  %p633_p13 = scmp.lt.s32.totalorder %s923_s22, %s631_s28  ;;  %p634_p3 = scmp.lt.s32.totalorder %s632_s6, %s626_s30 }
  0x7a   : > { %p629_p11 = pneg %p628_p1 }
  0x7b   : > { %v261_v18 = vcombine.high %v253_v13, %v253_v13  ;;  %v262_v19 = vcombine.high %v260_v14, %v260_v14  ;;  %v292_v20 = vcombine.high %v284_v15, %v284_v15  ;;  %v293_v21 = vcombine.high %v291_v16, %v291_v16  ;;  %p635_p2 = por %p634_p3, %p633_p13 }
  0x7d   : > { %p636_p5 = pnand %p635_p2, %p629_p11 }
  0xf2   : > { %v243_v17 = vpop.permute.xlu0 %242 }
  0xf3   : > { %v267_v22 = vmul.f32 %v253_v13, %v243_v17  ;;  %v268_v23 = vmul.f32 %v261_v18, %v243_v17  ;;  %v269_v24 = vmul.f32 %v260_v14, %v243_v17  ;;  %v270_v25 = vmul.f32 %v262_v19, %v243_v17 }
  0xf7   : > { %v274_v26 = vpop.permute.xlu0 %273 }
  0xf8   : > { %v298_v27 = vmul.f32 %v284_v15, %v274_v26  ;;  %v299_v28 = vmul.f32 %v292_v20, %v274_v26  ;;  %v300_v29 = vmul.f32 %v291_v16, %v274_v26  ;;  %v301_v30 = vmul.f32 %v293_v21, %v274_v26 }
  0xfa   : > { %v302_v31 = vadd.f32 %v298_v27, %v267_v22  ;;  %v303_v32 = vadd.f32 %v299_v28, %v268_v23  ;;  %v304_v33 = vadd.f32 %v300_v29, %v269_v24  ;;  %v305_v34 = vadd.f32 %v301_v30, %v270_v25 }
  0xfc   : > { %v310_v35 = vcombine.low %v302_v31, %v303_v32  ;;  %v311_v36 = vcombine.low %v304_v33, %v305_v34 }
  0xfe   : > { %v318_v37 = vrot.slane %v310_v35, %v252_v11  ;;  %v325_v38 = vrot.slane %v311_v36, %v252_v11 }
 0x100   : > { %v326_v39 = vcombine.low %v318_v37, %v325_v38 }
 0x102   : > { %328 = vst [vmem:[%s234_s8] sm:$0xff] %v326_v39 }
 0x103   : > { %639 = shalt.err (!%p636_p5)
}
 0x104   : > { %s640_s17 = scalar_lea.hbm %s921_s29, 128  ;;  %s644_s27 = scalar_lea.hbm %s969_s3, 256 }
 0x105   : > { %p641_p8 = scmp.ne.s32.totalorder %s921_s29, %s640_s17  ;;  %p645_p6 = scmp.lt.u32.totalorder %s921_s29, %s969_s3 }
 0x106   : > { %p646_p0 = scmp.lt.u32.totalorder %s644_s27, %s640_s17  ;;  %p648_p9 = scmp.lt.u32.totalorder %s640_s17, %s921_s29 }
 0x107   : > { %p642_p7 = pnand %p641_p8, %p988_p12 }
 0x108   : > { %p647_p10 = por %p646_p0, %p645_p6 }
 0x109   : > { %p643_p4 = pneg %p642_p7 }
 0x10a   : > { %p649_p1 = por %p648_p9, %p647_p10 }
 0x10c   : > { %p650_p11 = pnand %p649_p1, %p643_p4 }
 0x10e   : > { %653 = shalt.err (!%p650_p11)
}
 0x10f   : > { %477 = dma.vmem_to_hbm [thread:$0]  (%p988_p12), %s923_s22, 128, %s921_s29, %s330_s11  }
 0x110 PF: > { %s356_s5 = sand.u32 1, %s684_s12   ;;  %p989_p13 = scmp.ne.s32.totalorder %s978_s26, 0 }
 0x111   : > { %p990_p3 = scmp.ge.s32.totalorder %s696_s15, 2  ;;  %s357_s7 = scalar_lea.sflag [#allocation4], %s356_s5 }
 0x113   : > { %p491_p2 = pnand %p990_p3, %p989_p13 }
 0x115   : > { %679 = dma.done.wait (!%p491_p2), %s357_s7, 128  }
 0x116   : > { %681 = vsyncadd (!%p491_p2), %s357_s7, 4294967168  ;;  %p17_p5 = scmp.ge.s32.totalorder %s746_s16, 4   ;;  %s991_s12 = smov %s688_s13 }
 0x117   : > { %s992_s13 = smov %s692_s14  ;;  %s993_s14 = smov %s757_s19 }
 0x118   : > { %s994_s15 = smov %s746_s16  ;;  %19 = sbr.rel (!%p17_p5) target bundleno = 6 (0x6), region = 93 }
 0x11f   :  { %362 = vsyncpa [#allocation3], 1 }
 0x120   :  { %364 = vsyncpa [#allocation3 + $0x1], 1 }
 0x121   :  { %365 = vsyncpa [#allocation6], 1 }
 0x122   :  { %367 = vsyncpa [#allocation6 + $0x1], 1 }
 0x123   :  { %368 = vsyncpa [#allocation4], 1 }
 0x124   :  { %370 = vsyncpa [#allocation4 + $0x1], 1 }

</bundles_post_ra>
